<compile_context>
chip_gen: v5e
topology: v5e:2x2
jax: 0.10.0
libtpu: 0.0.40
codegen_flags: <defaults>
</compile_context>

<pallas_src>
import functools

import jax
import jax.numpy as jnp
from jax.experimental import pallas as pl
from jax.experimental.pallas import tpu as pltpu


def _round_up(x, m):
    return ((x + m - 1) // m) * m


_LANE = 128
_TARGET_TILE_BYTES = 16 * 1024 * 1024   # per input tile (v5e/v6e sweet spot)
_TILE_BUDGET_BYTES = 40 * 1024 * 1024   # double-buffered input tiles fit here
_VMEM_SOFT_CAP = 48 * 1024 * 1024       # stay well under v7x's 64 MiB VMEM


def _pool_kernel(x_ref, o_ref, acc_ref, *, is_avg, n_total, n_tile, inv_n,
                 needs_mask):
    """One (row_tile, n_tile) chunk; running reduce over the N grid axis."""
    k = pl.program_id(1)
    nk = pl.num_programs(1)

    def update(x):
        if is_avg:
            part = jnp.sum(x.astype(jnp.float32), axis=-1, keepdims=True)
            acc_ref[...] = acc_ref[...] + part
        else:
            part = jnp.max(x, axis=-1, keepdims=True)
            acc_ref[...] = jnp.maximum(acc_ref[...], part)

    @pl.when(k == 0)
    def _():
        if is_avg:
            acc_ref[...] = jnp.zeros_like(acc_ref)
        elif jnp.issubdtype(acc_ref.dtype, jnp.floating):
            acc_ref[...] = jnp.full_like(acc_ref, -jnp.inf)
        else:
            acc_ref[...] = jnp.full_like(acc_ref, jnp.iinfo(acc_ref.dtype).min)

    if needs_mask:
        # Only the last N chunk is partial; interior steps skip masking.
        @pl.when(k < nk - 1)
        def _():
            update(x_ref[...])

        @pl.when(k == nk - 1)
        def _():
            x = x_ref[...]
            lane = jax.lax.broadcasted_iota(jnp.int32, x.shape, 1)
            valid = n_total - k * n_tile
            if is_avg:
                fill = jnp.zeros((), x.dtype)
            elif jnp.issubdtype(x.dtype, jnp.floating):
                fill = jnp.array(-jnp.inf, x.dtype)
            else:
                fill = jnp.array(jnp.iinfo(x.dtype).min, x.dtype)
            update(jnp.where(lane < valid, x, fill))
    else:
        update(x_ref[...])

    @pl.when(k == nk - 1)
    def _():
        res = acc_ref[...]
        if is_avg:
            res = res * jnp.float32(inv_n)   # multiply, not divide
        o_ref[...] = res.astype(o_ref.dtype)


def pooling(x, pool_type="max", *, row_tile=None, n_tile=None,
            min_pallas_bytes=256 * 1024):
    """Pallas equivalent of Pooling(pool_type)(x) for x of shape [B, C, N]."""
    if pool_type not in ("max", "avg", "average"):
        raise ValueError(f"unsupported pool_type: {pool_type}")
    is_avg = pool_type in ("avg", "average")

    B, C, N = x.shape
    if is_avg and not jnp.issubdtype(x.dtype, jnp.floating):
        # torch.mean rejects integer inputs; mirror it so both paths agree.
        raise ValueError("pool_type='avg' requires a floating-point input")

    rows = B * C
    itemsize = jnp.dtype(x.dtype).itemsize

    # Fast path: tiny problems are dominated by kernel-launch overhead.
    if rows * N * itemsize < min_pallas_bytes:
        if is_avg:
            if x.dtype != jnp.float32:
                return jnp.mean(x.astype(jnp.float32), axis=2).astype(x.dtype)
            return jnp.mean(x, axis=2)
        return jnp.max(x, axis=2)

    # --- N (reduction) tiling: multiple of 128 lanes, or full extent. ---
    if n_tile is None:
        n_tile = min(N, 2048)
    n_tile = int(n_tile)
    if n_tile < N:
        n_tile = max(_LANE, (n_tile // _LANE) * _LANE)
        if n_tile >= N:
            n_tile = N
    else:
        n_tile = N

    # --- Row tiling: ~16 MiB input tiles, sublane-aligned for the dtype. ---
    sub = max(8, 32 // itemsize)
    rows_padded = _round_up(rows, sub)
    if row_tile is None:
        row_tile = max(sub,
                       (_TARGET_TILE_BYTES // (n_tile * itemsize)) // sub * sub)
    row_tile = _round_up(int(row_tile), sub)
    row_tile = min(row_tile, rows_padded)

    # v7x megacore: guarantee >=2 tiles on the parallel (row) axis when the
    # rows allow it, otherwise one of the two TensorCores idles all kernel.
    if rows_padded >= 2 * sub and pl.cdiv(rows, row_tile) < 2:
        row_tile = _round_up(pl.cdiv(rows, 2), sub)

    # Clamp so the double-buffered input tile fits the VMEM budget (v7x has
    # only 64 MiB per TensorCore; leave headroom for output + bookkeeping).
    max_tile_bytes = _TILE_BUDGET_BYTES // 2
    if row_tile * n_tile * itemsize > max_tile_bytes:
        rt = (max_tile_bytes // (n_tile * itemsize)) // sub * sub
        if rt >= sub:
            row_tile = min(row_tile, rt)
        else:
            row_tile = sub
            if n_tile > _LANE:
                nt = (max_tile_bytes // (row_tile * itemsize)) // _LANE * _LANE
                n_tile = max(_LANE, min(n_tile, nt))

    num_row_tiles = pl.cdiv(rows, row_tile)
    num_n_tiles = pl.cdiv(N, n_tile)

    tile_bytes = row_tile * n_tile * itemsize
    vmem_limit = int(min(_VMEM_SOFT_CAP,
                         max(32 * 1024 * 1024, 2 * tile_bytes + (2 << 20))))

    acc_dtype = jnp.float32 if is_avg else x.dtype

    kernel = functools.partial(
        _pool_kernel,
        is_avg=is_avg,
        n_total=N,
        n_tile=n_tile,
        inv_n=1.0 / float(N),
        needs_mask=(N % n_tile) != 0,
    )

    out2d = pl.pallas_call(
        kernel,
        out_shape=jax.ShapeDtypeStruct((rows, 1), x.dtype),
        grid_spec=pltpu.PrefetchScalarGridSpec(
            num_scalar_prefetch=0,
            grid=(num_row_tiles, num_n_tiles),
            in_specs=[pl.BlockSpec((row_tile, n_tile), lambda i, k: (i, k))],
            out_specs=pl.BlockSpec((row_tile, 1), lambda i, k: (i, 0)),
            scratch_shapes=[pltpu.VMEM((row_tile, 1), acc_dtype)],
        ),
        compiler_params=pltpu.CompilerParams(
            dimension_semantics=("parallel", "arbitrary"),
            vmem_limit_bytes=vmem_limit,
        ),
    )(x.reshape(rows, N))

    return out2d.reshape(B, C)


if __name__ == "__main__":
    key = jax.random.PRNGKey(0)
    k1, k2 = jax.random.split(key)

    # 1) Tiny shape -> fast path (pure jnp reduction).
    x_small = jax.random.normal(k1, (2, 8, 128), dtype=jnp.float32)
    out = jax.block_until_ready(pooling(x_small, "max"))
    assert out.shape == (2, 8)
    assert jnp.allclose(out, jnp.max(x_small, axis=2), atol=1e-6), "small max"
    out = jax.block_until_ready(pooling(x_small, "avg"))
    assert jnp.allclose(out, jnp.mean(x_small, axis=2), atol=1e-5), "small avg"

    # 2) Pallas path, default tiling: exercises the >=2-row-tile split
    #    (144 rows would otherwise collapse to one parallel tile).
    B, C, N = 2, 72, 1152
    x = jax.random.normal(k2, (B, C, N), dtype=jnp.float32)
    out_max = jax.block_until_ready(pooling(x, "max", min_pallas_bytes=0))
    ref_max = jnp.max(x, axis=2)
    assert out_max.shape == (B, C)
    assert jnp.allclose(out_max, ref_max, atol=1e-6), "default max mismatch"
    out_avg = jax.block_until_ready(pooling(x, "avg", min_pallas_bytes=0))
    ref_avg = jnp.mean(x, axis=2)
    assert jnp.allclose(out_avg, ref_avg, atol=1e-5, rtol=1e-5), \
        "default avg mismatch"

    # 3) Explicit tiling with a partial last N chunk: exercises the gated mask
    #    (interior chunks unmasked), row padding, and multi-step accumulator.
    out_max = jax.block_until_ready(
        pooling(x, "max", row_tile=128, n_tile=512, min_pallas_bytes=0))
    assert jnp.allclose(out_max, ref_max, atol=1e-6), "tiled max mismatch"
    out_avg = jax.block_until_ready(
        pooling(x, "avg", row_tile=128, n_tile=512, min_pallas_bytes=0))
    assert jnp.allclose(out_avg, ref_avg, atol=1e-5, rtol=1e-5), \
        "tiled avg mismatch"

    # 4) bf16 avg with default tiling: f32 accumulation inside the kernel.
    x_bf = x.astype(jnp.bfloat16)
    out_bf = jax.block_until_ready(pooling(x_bf, "avg", min_pallas_bytes=0))
    ref_bf = jnp.mean(x_bf.astype(jnp.float32), axis=2).astype(jnp.bfloat16)
    assert jnp.allclose(out_bf.astype(jnp.float32), ref_bf.astype(jnp.float32),
                        atol=1e-2, rtol=1e-2), "bf16 avg mismatch"

    # 5) int32 max (masked with iinfo.min) + avg-on-int rejection (torch.mean
    #    also rejects integer inputs).
    x_int = (x * 100.0).astype(jnp.int32)
    out_int = jax.block_until_ready(
        pooling(x_int, "max", n_tile=512, min_pallas_bytes=0))
    assert jnp.array_equal(out_int, jnp.max(x_int, axis=2)), "int max mismatch"
    try:
        pooling(x_int, "avg", min_pallas_bytes=0)
        raise AssertionError("avg on integer input should have raised")
    except ValueError:
        pass

    print("KERNEL_OK")
</pallas_src>

<mosaic_0001>
module attributes {stable_mosaic.version = 11 : i64} {
  func.func @_pool_kernel(%arg0: i32, %arg1: i32, %arg2: memref<72x1152xf32, #tpu.memory_space<vmem>>, %arg3: memref<72x1xf32, #tpu.memory_space<vmem>>, %arg4: memref<72x1xf32, #tpu.memory_space<vmem>>) attributes {dimension_semantics = [#tpu.dimension_semantics<parallel>, #tpu.dimension_semantics<arbitrary>], iteration_bounds = array<i64: 2, 1>, scalar_prefetch = 0 : i64, scratch_operands = 1 : i64, tpu.core_type = #tpu.core_type<tc>, window_params = [{transform_indices = @transform_0, window_bounds = array<i64: 72, 1152>}, {transform_indices = @transform_1, window_bounds = array<i64: 72, 1>}]} {
    %c0_i32 = arith.constant 0 : i32
    %0 = arith.cmpi eq, %arg1, %c0_i32 : i32
    %1 = arith.extui %0 : i1 to i32
    %c0_i32_0 = arith.constant 0 : i32
    %2 = arith.cmpi ne, %1, %c0_i32_0 : i32
    scf.if %2 {
      %cst_8 = arith.constant 0xFF800000 : f32
      %12 = vector.broadcast %cst_8 : f32 to vector<72x1xf32>
      %c0_9 = arith.constant 0 : index
      %c0_10 = arith.constant 0 : index
      %13 = vector.load %arg4[%c0_9, %c0_10] : memref<72x1xf32, #tpu.memory_space<vmem>>, vector<72x1xf32>
      tpu.vector_store %arg4[%c0_9, %c0_10], %12 {strides = array<i32>} : memref<72x1xf32, #tpu.memory_space<vmem>>, vector<72x1xf32>,
    } else {
    }
    %c0 = arith.constant 0 : index
    %c0_1 = arith.constant 0 : index
    %3 = vector.load %arg2[%c0, %c0_1] : memref<72x1152xf32, #tpu.memory_space<vmem>>, vector<72x1152xf32>
    %cst = arith.constant dense<0xFF800000> : vector<72xf32>
    %4 = vector.multi_reduction <maximumf>, %3, %cst [1] : vector<72x1152xf32> to vector<72xf32>
    %5 = vector.shape_cast %4 : vector<72xf32> to vector<72x1xf32>
    %c0_2 = arith.constant 0 : index
    %c0_3 = arith.constant 0 : index
    %6 = vector.load %arg4[%c0_2, %c0_3] : memref<72x1xf32, #tpu.memory_space<vmem>>, vector<72x1xf32>
    %7 = arith.maximumf %6, %5 : vector<72x1xf32>
    %c0_4 = arith.constant 0 : index
    %c0_5 = arith.constant 0 : index
    %8 = vector.load %arg4[%c0_4, %c0_5] : memref<72x1xf32, #tpu.memory_space<vmem>>, vector<72x1xf32>
    tpu.vector_store %arg4[%c0_4, %c0_5], %7 {strides = array<i32>} : memref<72x1xf32, #tpu.memory_space<vmem>>, vector<72x1xf32>,
    %c0_i32_6 = arith.constant 0 : i32
    %9 = arith.cmpi eq, %arg1, %c0_i32_6 : i32
    %10 = arith.extui %9 : i1 to i32
    %c0_i32_7 = arith.constant 0 : i32
    %11 = arith.cmpi ne, %10, %c0_i32_7 : i32
    scf.if %11 {
      %c0_8 = arith.constant 0 : index
      %c0_9 = arith.constant 0 : index
      %12 = vector.load %arg4[%c0_8, %c0_9] : memref<72x1xf32, #tpu.memory_space<vmem>>, vector<72x1xf32>
      %c0_10 = arith.constant 0 : index
      %c0_11 = arith.constant 0 : index
      %13 = vector.load %arg3[%c0_10, %c0_11] : memref<72x1xf32, #tpu.memory_space<vmem>>, vector<72x1xf32>
      tpu.vector_store %arg3[%c0_10, %c0_11], %12 {strides = array<i32>} : memref<72x1xf32, #tpu.memory_space<vmem>>, vector<72x1xf32>,
    } else {
    }
    return
  }
  func.func @transform_0(%arg0: i32, %arg1: i32) -> (i32, i32) {
    %c0_i32 = arith.constant 0 : i32
    return %arg0, %arg1 : i32, i32
  }
  func.func @transform_1(%arg0: i32, %arg1: i32) -> (i32, i32) {
    %c0_i32 = arith.constant 0 : i32
    %c0_i32_0 = arith.constant 0 : i32
    return %arg0, %c0_i32 : i32, i32
  }
}

</mosaic_0001>

<bundles_post_ra>
// kernel: tpu_custom_call.1
= control target key start
LH: loop header
LB: loop body
LE: loop exit
PB: predicated region body
PF: predicated region fallthrough
CT: control target
= control target key end

     0   :  { %6 = vsyncpa [#allocation4], 0  ;;  %s840_s0 = inlined_call_operand.hbm [shape: f32[144,1152], index: 0, kind: input, shape index: {}]   ;;  %s841_s1 = inlined_call_operand.vmem [shape: f32[144,1], index: 1, kind: output, shape index: {}]  }
   0x1   :  { %8 = vsyncpa [#allocation4 + $0x1], 0  ;;  %s638_s6 = smov 0   ;;  %s640_s7 = smov 0  }
   0x2   :  { %s642_s8 = smov 0   ;;  %s644_s9 = smov 0  }
   0x3   :  { %s646_s10 = smov 0   ;;  %s648_s11 = smov 0  }
   0x4 LB: > { %s472_s12 = sadd.s32 4294967295, %s623_s11   ;;  %s26_s13 = sadd.s32 1, %s619_s10  ;;  %s623_s11 = sphi %s648_s11, %s14_s11   ;;  %s619_s10 = sphi %s646_s10, %s847_s10   ;;  %s615_s9 = sphi %s644_s9, %s846_s9   ;;  %s611_s8 = sphi %s642_s8, %s845_s8   ;;  %s607_s7 = sphi %s640_s7, %s844_s7   ;;  %s603_s6 = sphi %s638_s6, %s843_s6  }
   0x5   : > { %p28_p0 = scmp.ge.s32.totalorder %s26_s13, 2  ;;  %s35_s14 = sadd.s32 1, %s611_s8 }
   0x6   : > { %p42_p1 = scmp.ne.s32.totalorder %s611_s8, %s607_s7  ;;  %p43_p2 = scmp.eq.s32.totalorder %s623_s11, 0 }
   0x7   : > { %s849_s13 = smov (%p28_p0, %s26_s13), 0  ;;  %p48_p4 = scmp.ne.s32.totalorder %s607_s7, %s603_s6 }
   0x8   : > { %p44_p3 = por %p43_p2, %p42_p1  ;;  %s30_s15 = ssub.s32 %s619_s10, %s849_s13 }
   0x9   : > { %p49_p5 = scmp.eq.s32.totalorder %s472_s12, 0  ;;  %p33_p6 = scmp.eq.s32.totalorder %s30_s15, 0 }
   0xa   : > { %p490_p8 = scmp.lt.s32.totalorder %s623_s11, 2  ;;  %s98_s18 = sand.u32 1, %s611_s8  }
   0xb   : > { %p677_p7 = por %p49_p5, %p48_p4  ;;  %s481_s19 = smul.u32 648, %s98_s18 }
   0xc   : > { %s683_s17 = scalar_select %p33_p6, %s611_s8, %s35_s14  }
   0xd   : > { %s491_s20 = smul.u32 648, %s619_s10  ;;  %p487_p9 = pnand %p490_p8, %p44_p3 }
   0xe   : > { %s102_s24 = scalar_lea.vmem [#allocation3], %s481_s19  ;;  %p477_p10 = scmp.ge.s32.totalorder %s623_s11, 1 }
   0xf   : > { %s110_s23 = scalar_lea.hbm %s840_s0, %s491_s20  ;;  %s113_s25 = sshll.u32 %s102_s24, 4  ;;  %s114_s25 = int_to_ptr.vmem [resolvable:$true] %s113_s25 }
  0x10   : > { %s111_s26 = sshll.u32 %s110_s23, 4  ;;  %s99_s27 = scalar_lea.sflag [#allocation4], %s98_s18  ;;  %s112_s26 = int_to_ptr.hbm [resolvable:$true] %s111_s26 }
  0x11   : > { %s625_s28 = smov 1152   ;;  %s626_s29 = smov 72  }
  0x12   : > { %489 = dma.hbm_to_vmem [thread:$0]  (!%p487_p9), %s112_s26, 10368, %s114_s25, %s99_s27, %s625_s28, %s625_s28, %s626_s29  }
  0x13   : > { %p121_p11 = scmp.lt.s32.totalorder %s623_s11, 3 }
  0x15   : > { %p122_p12 = pnand %p477_p10, %p121_p11 }
  0x16   : > { %s127_s30 = sand.u32 (!%p122_p12), 1, %s607_s7  }
  0x17   : > { %125 = sbr.rel (%p122_p12) target bundleno = 194 (0xc2), region = 24  ;;  %s128_s3 = scalar_lea.sflag (!%p122_p12), [#allocation4], %s127_s30 }
  0x18   : > { %s483_s2 = smul.u32 (!%p122_p12), 648, %s127_s30 }
  0x1a   : > { %s693_s4 = scalar_lea.vmem (!%p122_p12), [#allocation3], %s483_s2 }
  0x1c   : > { %598 = dma.done.wait (%p677_p7), %s128_s3, 10368  }
  0x1d   : > { %600 = vsyncadd (%p677_p7), %s128_s3, 4294956928  ;;  %v209_v0 = vld [vmem:[%s693_s4 + $0x120] sm:$0xff]  ;;  %v210_v1 = vld [vmem:[%s693_s4 + $0x128] sm:$0xff]  ;;  %vm163_vm0 = vcmask 7168   ;;  %v627_v35 = vmov -inf   ;;  %s153_s5 = smul.u32 9, %s615_s9 }
  0x1e   : > { %v211_v2 = vld [vmem:[%s693_s4 + $0x130] sm:$0xff]  ;;  %v294_v3 = vmax.f32 %v209_v0, %v210_v1  ;;  %v212_v4 = vld [vmem:[%s693_s4 + $0x138] sm:$0xff]  ;;  %v193_v8 = vld [vmem:[%s693_s4 + $0xa0] sm:$0xff]  ;;  %168 = vst.msk [vmem:[#allocation2 + $0x20] sm:$0xff] %vm163_vm0, %v627_v35 }
  0x1f   : > { %v191_v6 = vld [vmem:[%s693_s4 + $0x90] sm:$0xff]  ;;  %v192_v7 = vld [vmem:[%s693_s4 + $0x98] sm:$0xff]  ;;  %v213_v9 = vld [vmem:[%s693_s4 + $0x140] sm:$0xff]  ;;  %164 = vst.msk [vmem:[#allocation2] sm:$0xff] %vm163_vm0, %v627_v35  ;;  %p154_p13 = scmp.lt.s32.totalorder %s153_s5, 17 }
  0x20   : > { %v295_v5 = vmax.f32 %v294_v3, %v211_v2  ;;  %v274_v10 = vmax.f32 %v191_v6, %v192_v7  ;;  %v214_v11 = vld [vmem:[%s693_s4 + $0x148] sm:$0xff]  ;;  %v173_v15 = vld [vmem:[%s693_s4] sm:$0xff]  ;;  %v175_v17 = vld [vmem:[%s693_s4 + $0x10] sm:$0xff]  ;;  %165 = vst.msk [vmem:[#allocation2 + $0x8] sm:$0xff] %vm163_vm0, %v627_v35 }
  0x21   : > { %v194_v13 = vld [vmem:[%s693_s4 + $0xa8] sm:$0xff]  ;;  %v195_v19 = vld [vmem:[%s693_s4 + $0xb0] sm:$0xff]  ;;  %v196_v22 = vld [vmem:[%s693_s4 + $0xb8] sm:$0xff]  ;;  %166 = vst.msk [vmem:[#allocation2 + $0x10] sm:$0xff] %vm163_vm0, %v627_v35  ;;  %s851_s5 = smov (!%p154_p13, %s153_s5), 17 }
  0x22   : > { %v296_v12 = vmax.f32 %v295_v5, %v212_v4  ;;  %v275_v14 = vmax.f32 %v274_v10, %v193_v8  ;;  %v174_v16 = vld [vmem:[%s693_s4 + $0x8] sm:$0xff]  ;;  %v215_v21 = vld [vmem:[%s693_s4 + $0x150] sm:$0xff]  ;;  %v176_v24 = vld [vmem:[%s693_s4 + $0x18] sm:$0xff]  ;;  %167 = vst.msk [vmem:[#allocation2 + $0x18] sm:$0xff] %vm163_vm0, %v627_v35  ;;  %s478_s6 = sshll.u32 %s851_s5, 3 }
  0x23   : > { %v254_v20 = vmax.f32 %v173_v15, %v174_v16  ;;  %v218_v27 = vld [vmem:[%s693_s4 + $0x168] sm:$0xff]  ;;  %v219_v28 = vld [vmem:[%s693_s4 + $0x170] sm:$0xff]  ;;  %v220_v29 = vld [vmem:[%s693_s4 + $0x178] sm:$0xff]  ;;  %169 = vst.msk [vmem:[#allocation2 + $0x28] sm:$0xff] %vm163_vm0, %v627_v35  ;;  %s795_s9 = scalar_lea.vmem %s841_s1, %s478_s6 }
  0x24   : > { %v297_v18 = vmax.f32 %v296_v12, %v213_v9  ;;  %v276_v23 = vmax.f32 %v275_v14, %v194_v13  ;;  %v216_v30 = vld [vmem:[%s693_s4 + $0x158] sm:$0xff]  ;;  %v217_v31 = vld [vmem:[%s693_s4 + $0x160] sm:$0xff]  ;;  %v304_v34 = vmax.f32 %v218_v27, %v219_v28  ;;  %v178_v38 = vld [vmem:[%s693_s4 + $0x28] sm:$0xff]  ;;  %170 = vst.msk [vmem:[#allocation2 + $0x30] sm:$0xff] %vm163_vm0, %v627_v35 }
  0x25   : > { %v255_v26 = vmax.f32 %v254_v20, %v175_v17  ;;  %v177_v33 = vld [vmem:[%s693_s4 + $0x20] sm:$0xff]  ;;  %v200_v43 = vld [vmem:[%s693_s4 + $0xd8] sm:$0xff]  ;;  %v202_v45 = vld [vmem:[%s693_s4 + $0xe8] sm:$0xff]  ;;  %171 = vst.msk [vmem:[#allocation2 + $0x38] sm:$0xff] %vm163_vm0, %v627_v35 }
  0x26   : > { %v298_v25 = vmax.f32 %v297_v18, %v214_v11  ;;  %v277_v32 = vmax.f32 %v276_v23, %v195_v19  ;;  %v197_v37 = vld [vmem:[%s693_s4 + $0xc0] sm:$0xff]  ;;  %v305_v42 = vmax.f32 %v304_v34, %v220_v29  ;;  %v198_v47 = vld [vmem:[%s693_s4 + $0xc8] sm:$0xff]  ;;  %v199_v48 = vld [vmem:[%s693_s4 + $0xd0] sm:$0xff]  ;;  %172 = vst.msk [vmem:[#allocation2 + $0x40] sm:$0xff] %vm163_vm0, %v627_v35 }
  0x27   : > { %v256_v39 = vmax.f32 %v255_v26, %v176_v24  ;;  %v221_v40 = vld [vmem:[%s693_s4 + $0x180] sm:$0xff]  ;;  %v222_v50 = vld [vmem:[%s693_s4 + $0x188] sm:$0xff]  ;;  %v179_v53 = vld [vmem:[%s693_s4 + $0x30] sm:$0xff] }
  0x28   : > { %v299_v36 = vmax.f32 %v298_v25, %v215_v21  ;;  %v278_v41 = vmax.f32 %v277_v32, %v196_v22  ;;  %v201_v44 = vld [vmem:[%s693_s4 + $0xe0] sm:$0xff]  ;;  %v223_v54 = vld [vmem:[%s693_s4 + $0x190] sm:$0xff]  ;;  %v306_v55 = vmax.f32 %v305_v42, %v221_v40  ;;  %v182_v60 = vld [vmem:[%s693_s4 + $0x48] sm:$0xff] }
  0x29   : > { %v257_v49 = vmax.f32 %v256_v39, %v177_v33  ;;  %v284_v51 = vmax.f32 %v200_v43, %v201_v44  ;;  %v203_v56 = vld [vmem:[%s693_s4 + $0xf0] sm:$0xff]  ;;  %v184_v62 = vld [vmem:[%s693_s4 + $0x58] sm:$0xff]  ;;  %v181_v1 = vld [vmem:[%s693_s4 + $0x40] sm:$0xff] }
  0x2a   : > { %v300_v46 = vmax.f32 %v299_v36, %v216_v30  ;;  %v279_v52 = vmax.f32 %v278_v41, %v197_v37  ;;  %v183_v61 = vld [vmem:[%s693_s4 + $0x50] sm:$0xff]  ;;  %v180_v0 = vld [vmem:[%s693_s4 + $0x38] sm:$0xff]  ;;  %v307_v2 = vmax.f32 %v306_v55, %v222_v50  ;;  %v205_v7 = vld [vmem:[%s693_s4 + $0x100] sm:$0xff] }
  0x2b   : > { %v258_v58 = vmax.f32 %v257_v49, %v178_v38  ;;  %v285_v59 = vmax.f32 %v284_v51, %v202_v45  ;;  %v204_v3 = vld [vmem:[%s693_s4 + $0xf8] sm:$0xff]  ;;  %v264_v4 = vmax.f32 %v182_v60, %v183_v61  ;;  %v185_v9 = vld [vmem:[%s693_s4 + $0x60] sm:$0xff]  ;;  %v246_v14 = vld [vmem:[%s693_s4 + $0x248] sm:$0xff] }
  0x2c   : > { %v301_v57 = vmax.f32 %v300_v46, %v217_v31  ;;  %v280_v63 = vmax.f32 %v279_v52, %v198_v47  ;;  %v224_v6 = vld [vmem:[%s693_s4 + $0x198] sm:$0xff]  ;;  %v308_v11 = vmax.f32 %v307_v2, %v223_v54  ;;  %v245_v13 = vld [vmem:[%s693_s4 + $0x240] sm:$0xff]  ;;  %v247_v15 = vld [vmem:[%s693_s4 + $0x250] sm:$0xff] }
  0x2d   : > { %v259_v5 = vmax.f32 %v258_v58, %v179_v53  ;;  %v286_v8 = vmax.f32 %v285_v59, %v203_v56  ;;  %v265_v12 = vmax.f32 %v264_v4, %v184_v62  ;;  %v225_v17 = vld [vmem:[%s693_s4 + $0x1a0] sm:$0xff]  ;;  %v226_v18 = vld [vmem:[%s693_s4 + $0x1a8] sm:$0xff]  ;;  %v334_v21 = vmax.f32 %v245_v13, %v246_v14  ;;  %v187_v24 = vld [vmem:[%s693_s4 + $0x70] sm:$0xff] }
  0x2e   : > { %302 = vmax.xlane.f32.xlu2 %v301_v57  ;;  %v281_v10 = vmax.f32 %v280_v63, %v199_v48  ;;  %v186_v20 = vld [vmem:[%s693_s4 + $0x68] sm:$0xff]  ;;  %v309_v22 = vmax.f32 %v308_v11, %v224_v6  ;;  %v248_v26 = vld [vmem:[%s693_s4 + $0x258] sm:$0xff]  ;;  %v237_v31 = vld [vmem:[%s693_s4 + $0x200] sm:$0xff] }
  0x2f   : > { %v260_v16 = vmax.f32 %v259_v5, %v180_v0  ;;  %v287_v19 = vmax.f32 %v286_v8, %v204_v3  ;;  %v206_v23 = vld [vmem:[%s693_s4 + $0x108] sm:$0xff]  ;;  %v266_v25 = vmax.f32 %v265_v12, %v185_v9  ;;  %v335_v29 = vmax.f32 %v334_v21, %v247_v15  ;;  %v236_v30 = vld [vmem:[%s693_s4 + $0x1f8] sm:$0xff]  ;;  %v207_v34 = vld [vmem:[%s693_s4 + $0x110] sm:$0xff] }
  0x30   : > { %282 = vmax.xlane.f32.xlu1 %v281_v10  ;;  %v238_v32 = vld [vmem:[%s693_s4 + $0x208] sm:$0xff]  ;;  %v310_v33 = vmax.f32 %v309_v22, %v225_v17  ;;  %v208_v35 = vld [vmem:[%s693_s4 + $0x118] sm:$0xff]  ;;  %v249_v37 = vld [vmem:[%s693_s4 + $0x260] sm:$0xff]  ;;  %v324_v38 = vmax.f32 %v236_v30, %v237_v31 }
  0x31   : > { %v261_v27 = vmax.f32 %v260_v16, %v181_v1  ;;  %v288_v28 = vmax.f32 %v287_v19, %v205_v7  ;;  %v267_v36 = vmax.f32 %v266_v25, %v186_v20  ;;  %v188_v40 = vld [vmem:[%s693_s4 + $0x78] sm:$0xff]  ;;  %v250_v41 = vld [vmem:[%s693_s4 + $0x268] sm:$0xff]  ;;  %v336_v42 = vmax.f32 %v335_v29, %v248_v26  ;;  %v239_v43 = vld [vmem:[%s693_s4 + $0x210] sm:$0xff] }
  0x32   : > { %v311_v44 = vmax.f32 %v310_v33, %v226_v18  ;;  %v325_v46 = vmax.f32 %v324_v38, %v238_v32  ;;  %v227_v47 = vld [vmem:[%s693_s4 + $0x1b0] sm:$0xff]  ;;  %v228_v48 = vld [vmem:[%s693_s4 + $0x1b8] sm:$0xff]  ;;  %v229_v49 = vld [vmem:[%s693_s4 + $0x1c0] sm:$0xff] }
  0x33   : > { %262 = vmax.xlane.f32.xlu0 %v261_v27  ;;  %v289_v39 = vmax.f32 %v288_v28, %v206_v23  ;;  %v268_v45 = vmax.f32 %v267_v36, %v187_v24  ;;  %v189_v51 = vld [vmem:[%s693_s4 + $0x80] sm:$0xff]  ;;  %v337_v52 = vmax.f32 %v336_v42, %v249_v37  ;;  %v240_v53 = vld [vmem:[%s693_s4 + $0x218] sm:$0xff]  ;;  %v314_v54 = vmax.f32 %v227_v47, %v228_v48  ;;  %v251_v56 = vld [vmem:[%s693_s4 + $0x270] sm:$0xff] }
  0x34   : > { %v326_v57 = vmax.f32 %v325_v46, %v239_v43  ;;  %v230_v58 = vld [vmem:[%s693_s4 + $0x1c8] sm:$0xff]  ;;  %v241_v62 = vld [vmem:[%s693_s4 + $0x220] sm:$0xff]  ;;  %v252_v1 = vld [vmem:[%s693_s4 + $0x278] sm:$0xff] }
  0x35   : > { %v290_v50 = vmax.f32 %v289_v39, %v207_v34  ;;  %v269_v55 = vmax.f32 %v268_v45, %v188_v40  ;;  %v190_v60 = vld [vmem:[%s693_s4 + $0x88] sm:$0xff]  ;;  %v338_v61 = vmax.f32 %v337_v52, %v250_v41  ;;  %v315_v63 = vmax.f32 %v314_v54, %v229_v49  ;;  %v231_v3 = vld [vmem:[%s693_s4 + $0x1d0] sm:$0xff]  ;;  %v253_v8 = vld [vmem:[%s693_s4 + $0x280] sm:$0xff] }
  0x36   : > { %312 = vmax.xlane.f32.xlu2 %v311_v44  ;;  %v327_v2 = vmax.f32 %v326_v57, %v240_v53  ;;  %v242_v5 = vld [vmem:[%s693_s4 + $0x228] sm:$0xff]  ;;  %v232_v10 = vld [vmem:[%s693_s4 + $0x1d8] sm:$0xff]  ;;  %v243_v12 = vld [vmem:[%s693_s4 + $0x230] sm:$0xff] }
  0x37   : > { %v291_v59 = vmax.f32 %v290_v50, %v208_v35  ;;  %v270_v0 = vmax.f32 %v269_v55, %v189_v51  ;;  %v339_v4 = vmax.f32 %v338_v61, %v251_v56  ;;  %v316_v6 = vmax.f32 %v315_v63, %v230_v58  ;;  %v233_v15 = vld [vmem:[%s693_s4 + $0x1e0] sm:$0xff]  ;;  %v244_v17 = vld [vmem:[%s693_s4 + $0x238] sm:$0xff]  ;;  %v234_v20 = vld [vmem:[%s693_s4 + $0x1e8] sm:$0xff] }
  0x38   : > { %v328_v9 = vmax.f32 %v327_v2, %v241_v62  ;;  %v235_v23 = vld [vmem:[%s693_s4 + $0x1f0] sm:$0xff]  ;;  %v346_v29 = vld [vmem:[#allocation2 + $0x10] sm:$0xff]  ;;  %v349_v35 = vld [vmem:[#allocation2 + $0x28] sm:$0xff] }
  0x39   : > { %292 = vmax.xlane.f32.xlu1 %v291_v59  ;;  %v271_v7 = vmax.f32 %v270_v0, %v190_v60  ;;  %v340_v11 = vmax.f32 %v339_v4, %v252_v1  ;;  %v317_v13 = vmax.f32 %v316_v6, %v231_v3  ;;  %v348_v26 = vld [vmem:[#allocation2 + $0x20] sm:$0xff]  ;;  %v347_v39 = vld [vmem:[#allocation2 + $0x18] sm:$0xff]  ;;  %v345_v43 = vld [vmem:[#allocation2 + $0x8] sm:$0xff] }
  0x3a   : > { %v329_v14 = vmax.f32 %v328_v9, %v242_v5  ;;  %v344_v32 = vld [vmem:[#allocation2] sm:$0xff]  ;;  %v351_v51 = vld [vmem:[#allocation2 + $0x38] sm:$0xff]  ;;  %v350_v55 = vld [vmem:[#allocation2 + $0x30] sm:$0xff] }
  0x3b   : > { %272 = vmax.xlane.f32.xlu0 %v271_v7  ;;  %v341_v16 = vmax.f32 %v340_v11, %v253_v8  ;;  %v318_v18 = vmax.f32 %v317_v13, %v232_v10  ;;  %v352_v47 = vld [vmem:[#allocation2 + $0x40] sm:$0xff] }
  0x3c   : > { %v330_v19 = vmax.f32 %v329_v14, %v243_v12 }
  0x3d   : > { %v319_v21 = vmax.f32 %v318_v18, %v233_v15 }
  0x3e   : > { %342 = vmax.xlane.f32.xlu2 %v341_v16  ;;  %v331_v22 = vmax.f32 %v330_v19, %v244_v17 }
  0x3f   : > { %v320_v24 = vmax.f32 %v319_v21, %v234_v20 }
  0x41   : > { %332 = vmax.xlane.f32.xlu1 %v331_v22  ;;  %v321_v25 = vmax.f32 %v320_v24, %v235_v23 }
  0x43   : > { %322 = vmax.xlane.f32.xlu0 %v321_v25 }
  0xa1   : > { %v303_v27 = vpop.xlane.xlu2 %302 }
  0xa2   : > { %v357_v28 = vmax.f32 %v348_v26, %v303_v27 }
  0xa3   : > { %v283_v30 = vpop.xlane.xlu1 %282 }
  0xa4   : > { %367 = vst.msk [vmem:[#allocation2 + $0x20] sm:$0xff] %vm163_vm0, %v357_v28  ;;  %v355_v31 = vmax.f32 %v346_v29, %v283_v30 }
  0xa6   : > { %365 = vst.msk [vmem:[#allocation2 + $0x10] sm:$0xff] %vm163_vm0, %v355_v31  ;;  %v263_v33 = vpop.xlane.xlu0 %262 }
  0xa7   : > { %v353_v34 = vmax.f32 %v344_v32, %v263_v33 }
  0xa9   : > { %363 = vst.msk [vmem:[#allocation2] sm:$0xff] %vm163_vm0, %v353_v34  ;;  %v313_v36 = vpop.xlane.xlu2 %312 }
  0xaa   : > { %v358_v38 = vmax.f32 %v349_v35, %v313_v36 }
  0xab   : > { %v379_v37 = vld [vmem:[#allocation2 + $0x20] sm:$0xff] }
  0xac   : > { %388 = vst.msk [vmem:[%s795_s9 + $0x20] sm:$0xff] %vm163_vm0, %v379_v37  ;;  %v293_v40 = vpop.xlane.xlu1 %292 }
  0xad   : > { %368 = vst.msk [vmem:[#allocation2 + $0x28] sm:$0xff] %vm163_vm0, %v358_v38  ;;  %v377_v41 = vld [vmem:[#allocation2 + $0x10] sm:$0xff]  ;;  %v356_v42 = vmax.f32 %v347_v39, %v293_v40 }
  0xae   : > { %386 = vst.msk [vmem:[%s795_s9 + $0x10] sm:$0xff] %vm163_vm0, %v377_v41  ;;  %v273_v44 = vpop.xlane.xlu0 %272 }
  0xaf   : > { %366 = vst.msk [vmem:[#allocation2 + $0x18] sm:$0xff] %vm163_vm0, %v356_v42  ;;  %v354_v46 = vmax.f32 %v345_v43, %v273_v44 }
  0xb0   : > { %v375_v45 = vld [vmem:[#allocation2] sm:$0xff] }
  0xb1   : > { %384 = vst.msk [vmem:[%s795_s9] sm:$0xff] %vm163_vm0, %v375_v45  ;;  %v343_v48 = vpop.xlane.xlu2 %342 }
  0xb2   : > { %364 = vst.msk [vmem:[#allocation2 + $0x8] sm:$0xff] %vm163_vm0, %v354_v46  ;;  %v361_v50 = vmax.f32 %v352_v47, %v343_v48 }
  0xb4   : > { %v380_v49 = vld [vmem:[#allocation2 + $0x28] sm:$0xff]  ;;  %371 = vst.msk [vmem:[#allocation2 + $0x40] sm:$0xff] %vm163_vm0, %v361_v50  ;;  %v333_v52 = vpop.xlane.xlu1 %332 }
  0xb5   : > { %389 = vst.msk [vmem:[%s795_s9 + $0x28] sm:$0xff] %vm163_vm0, %v380_v49  ;;  %v360_v54 = vmax.f32 %v351_v51, %v333_v52 }
  0xb6   : > { %v378_v53 = vld [vmem:[#allocation2 + $0x18] sm:$0xff]  ;;  %v323_v56 = vpop.xlane.xlu0 %322 }
  0xb7   : > { %387 = vst.msk [vmem:[%s795_s9 + $0x18] sm:$0xff] %vm163_vm0, %v378_v53  ;;  %v359_v58 = vmax.f32 %v350_v55, %v323_v56 }
  0xb8   : > { %370 = vst.msk [vmem:[#allocation2 + $0x38] sm:$0xff] %vm163_vm0, %v360_v54 }
  0xb9   : > { %v376_v57 = vld [vmem:[#allocation2 + $0x8] sm:$0xff]  ;;  %369 = vst.msk [vmem:[#allocation2 + $0x30] sm:$0xff] %vm163_vm0, %v359_v58 }
  0xba   : > { %385 = vst.msk [vmem:[%s795_s9 + $0x8] sm:$0xff] %vm163_vm0, %v376_v57 }
  0xbb   : > { %v383_v59 = vld [vmem:[#allocation2 + $0x40] sm:$0xff] }
  0xbc   : > { %392 = vst.msk [vmem:[%s795_s9 + $0x40] sm:$0xff] %vm163_vm0, %v383_v59 }
  0xbf   : > { %v382_v60 = vld [vmem:[#allocation2 + $0x38] sm:$0xff] }
  0xc0   : > { %391 = vst.msk [vmem:[%s795_s9 + $0x38] sm:$0xff] %vm163_vm0, %v382_v60  ;;  %v381_v61 = vld [vmem:[#allocation2 + $0x30] sm:$0xff] }
  0xc1   : > { %390 = vst.msk [vmem:[%s795_s9 + $0x30] sm:$0xff] %vm163_vm0, %v381_v61 }
  0xc2 PF: > { %s14_s11 = sadd.s32 1, %s623_s11   ;;  %s843_s6 = smov %s607_s7 }
  0xc3   : > { %p11_p0 = scmp.ge.s32.totalorder %s14_s11, 4   ;;  %s844_s7 = smov %s611_s8 }
  0xc4   : > { %s845_s8 = smov %s683_s17  ;;  %s846_s9 = smov %s619_s10 }
  0xc5   : > { %s847_s10 = smov %s849_s13  ;;  %13 = sbr.rel (!%p11_p0) target bundleno = 4 (0x4), region = 72 }
  0xca   :  { %415 = vsyncpa [#allocation4], 1 }
  0xcb   :  { %417 = vsyncpa [#allocation4 + $0x1], 1 }

</bundles_post_ra>
